<compile_context>
chip_gen: v6e
topology: v6e:2x2x1
jax: 0.10.0
libtpu: 0.0.40
codegen_flags: <defaults>
</compile_context>

<pallas_src>
import functools

import jax
import jax.numpy as jnp
from jax.experimental import pallas as pl
from jax.experimental.pallas import tpu as pltpu


def _round_up(x, m):
    return ((x + m - 1) // m) * m


def _pick_block_b(n_b, sp, hp):
    """Batch-tile size: multiple of 8, targets ~4 MiB of per-step f32 encode."""
    target_rows = max(8, (4 * 1024 * 1024) // (hp * 4))
    bt = max(8, ((target_rows // sp) // 8) * 8)
    return min(bt, _round_up(n_b, 8))


# ----------------------------------------------------------------------------
# Fused kernel (one grid step = Bt batch elements, full sequence):
#   gather (one-hot @ table, MXU) -> tanh(x @ W + b) -> pool -> L2 normalize.
#
# Refs per step:
#   ids_ref: (Bt*Sp, 1) int32     [m_ref: (Bt*Sp, 1) f32, max/mean only]
#   emb_ref: (Vp, Hp) bf16        w_ref: (Hp, Hp) bf16     b_ref: (1, Hp) f32
#   o_ref:   (Bt, Hp) f32
# ----------------------------------------------------------------------------
def _fused_kernel(*refs, pooling_type, bt, sp, vp):
    if pooling_type == "cls":
        ids_ref, emb_ref, w_ref, b_ref, o_ref = refs
        m_ref = None
    else:
        ids_ref, m_ref, emb_ref, w_ref, b_ref, o_ref = refs

    rows = bt * sp

    # ---- in-kernel embedding gather: one-hot row select on the MXU ---------
    ids = ids_ref[...]                                         # (rows, 1) int32
    col = jax.lax.broadcasted_iota(jnp.int32, (rows, vp), 1)   # lane iota
    onehot = (col == ids).astype(jnp.float32).astype(jnp.bfloat16)
    x = jnp.dot(onehot, emb_ref[...],
                preferred_element_type=jnp.float32)            # (rows, Hp) f32
    x = x.astype(jnp.bfloat16)                                 # exact bf16 rows

    # ---- dense encoder layer: bf16 MXU, f32 accumulate, tanh in f32 --------
    y = jnp.dot(x, w_ref[...], preferred_element_type=jnp.float32)
    te = jnp.tanh(y + b_ref[...])                              # (rows, Hp) f32
    hp = te.shape[-1]

    # ---- pooling ------------------------------------------------------------
    if pooling_type == "cls":
        v = te                                                 # sp == 1: (bt, Hp)
    else:
        te3 = te.reshape(bt, sp, hp)                           # leading-dim split
        m3 = m_ref[...].reshape(bt, sp, 1)
        if pooling_type == "max":
            v = jnp.max(jnp.where(m3 == 0.0, jnp.float32(-1e9), te3), axis=1)
        elif pooling_type == "mean":
            v = (jnp.sum(te3 * m3, axis=1)
                 / jnp.maximum(jnp.sum(m3, axis=1), jnp.float32(1e-9)))
        else:
            raise ValueError(f"Unsupported pooling type: {pooling_type}")

    # ---- L2 normalize (padded lanes are exactly 0: zero-padded W/b cols) ----
    ssq = jnp.sum(v * v, axis=-1, keepdims=True)               # (bt, 1)
    inv = jax.lax.rsqrt(jnp.maximum(ssq, jnp.float32(1e-24)))  # EUP rsqrt
    o_ref[...] = (v * inv).astype(o_ref.dtype)


def multilingual_lm_forward(input_ids, attention_mask, emb_table, w, b, *,
                            pooling_type, h_real, block_b=None):
    """input_ids / attention_mask: (B, S); emb_table: (Vp, Hp) bf16;
    w: (Hp, Hp) bf16; b: (1, Hp) f32.  Returns (B, h_real) f32."""
    B, S = input_ids.shape
    Vp, Hp = emb_table.shape

    ids = input_ids.astype(jnp.int32)
    if pooling_type == "cls":
        ids = ids[:, :1]                      # only token 0 is ever pooled
        mask = None
        Sp = 1
    else:
        mask = attention_mask.astype(jnp.float32)
        pad_s = (-S) % 8                      # masked-out rows: no effect
        if pad_s:
            ids = jnp.pad(ids, ((0, 0), (0, pad_s)))
            mask = jnp.pad(mask, ((0, 0), (0, pad_s)))
        Sp = S + pad_s

    Bt = block_b or _pick_block_b(B, Sp, Hp)
    B_pad = _round_up(B, Bt)
    if B_pad > B:                             # dummy batch rows, dropped later
        ids = jnp.pad(ids, ((0, B_pad - B), (0, 0)))
        if mask is not None:
            mask = jnp.pad(mask, ((0, B_pad - B), (0, 0)), constant_values=1.0)

    rows_blk = Bt * Sp
    inputs = [ids.reshape(B_pad * Sp, 1)]
    in_specs = [pl.BlockSpec((rows_blk, 1), lambda bi: (bi, 0))]
    if mask is not None:                      # cls never DMAs the mask
        inputs.append(mask.reshape(B_pad * Sp, 1))
        in_specs.append(pl.BlockSpec((rows_blk, 1), lambda bi: (bi, 0)))
    inputs += [emb_table, w, b]
    in_specs += [
        pl.BlockSpec((Vp, Hp), lambda bi: (0, 0)),   # embed table: VMEM-resident
        pl.BlockSpec((Hp, Hp), lambda bi: (0, 0)),   # weights: resident
        pl.BlockSpec((1, Hp), lambda bi: (0, 0)),    # bias: resident
    ]

    kernel = functools.partial(_fused_kernel, pooling_type=pooling_type,
                               bt=Bt, sp=Sp, vp=Vp)

    out = pl.pallas_call(
        kernel,
        out_shape=jax.ShapeDtypeStruct((B_pad, Hp), jnp.float32),
        grid_spec=pltpu.PrefetchScalarGridSpec(
            num_scalar_prefetch=0,
            grid=(B_pad // Bt,),
            in_specs=in_specs,
            out_specs=pl.BlockSpec((Bt, Hp), lambda bi: (bi, 0)),
        ),
        compiler_params=pltpu.CompilerParams(
            # Independent batch tiles.  On v7x, switch to pltpu.CORE_PARALLEL
            # if the xprof trace shows one TensorCore idle.
            dimension_semantics=("parallel",),
            # Toy working set << 1 MiB; keep well under v7x's 64 MiB VMEM.
            vmem_limit_bytes=32 * 1024 * 1024,
        ),
    )(*inputs)

    return out[:B, :h_real]


# ----------------------------------------------------------------------------
# MultilingualLM (synthetic encoder), fully fused into one Pallas kernel.
# ----------------------------------------------------------------------------
class MultilingualLM:
    def __init__(self, model_type="sbert", pooling_type="mean",
                 vocab_size=64, hidden=32, seed=0):
        if pooling_type not in ("cls", "max", "mean"):
            raise Exception(f"Unsupported pooling type: {pooling_type}")
        self.model_type = model_type
        self.pooling_type = pooling_type
        self.max_seq_length = 128 if model_type == "sbert" else 512
        self.hidden = hidden
        self.vocab_size = vocab_size
        # Lane-dense padded sizes.  TODO(synk): for real hidden sizes prefer a
        # multiple of 256 (v6e/v7x 2x256x256 MXU); 128 only fills a quarter pass.
        self.hidden_padded = _round_up(max(hidden, 128), 128)
        self.vocab_padded = _round_up(max(vocab_size, 128), 128)

        key = jax.random.PRNGKey(seed)
        k_emb, k_w, k_b = jax.random.split(key, 3)
        emb = jax.random.normal(k_emb, (vocab_size, hidden), jnp.float32) * 0.02
        w = jax.random.normal(k_w, (hidden, hidden), jnp.float32) * 0.05
        b = jax.random.normal(k_b, (1, hidden), jnp.float32) * 0.01

        hp, vp = self.hidden_padded, self.vocab_padded
        # Zero-padded, lane-dense parameters; MXU operands stored in bf16.
        self.embed_table = (jnp.zeros((vp, hp), jnp.bfloat16)
                            .at[:vocab_size, :hidden]
                            .set(emb.astype(jnp.bfloat16)))
        self.w = (jnp.zeros((hp, hp), jnp.bfloat16)
                  .at[:hidden, :hidden].set(w.astype(jnp.bfloat16)))
        self.b = jnp.zeros((1, hp), jnp.float32).at[:, :hidden].set(b)

    def __call__(self, input_ids, attention_mask):
        """input_ids: (B, S) int32, attention_mask: (B, S) {0, 1}."""
        # TODO(synk): HF tokenizer + pretrained encoder have no Pallas
        #             equivalent; replaced by this synthetic deterministic
        #             embedding + dense-tanh encoder, fully fused in-kernel.
        return multilingual_lm_forward(
            input_ids, attention_mask, self.embed_table, self.w, self.b,
            pooling_type=self.pooling_type, h_real=self.hidden)


# ----------------------------------------------------------------------------
# Pure-JAX reference (same synthetic weights) for a correctness check.
# ----------------------------------------------------------------------------
def _reference_forward(model, input_ids, attention_mask):
    x = jnp.take(model.embed_table, input_ids, axis=0).astype(jnp.float32)
    te = jnp.tanh(x @ model.w.astype(jnp.float32) + model.b)    # (B, S, Hp)
    m = attention_mask.astype(jnp.float32)[:, :, None]          # (B, S, 1)
    if model.pooling_type == "cls":
        v = te[:, 0, :]
    elif model.pooling_type == "max":
        v = jnp.max(jnp.where(m == 0.0, -1e9, te), axis=1)
    else:  # mean
        v = jnp.sum(te * m, axis=1) / jnp.maximum(jnp.sum(m, axis=1), 1e-9)
    v = v[:, :model.hidden]
    n = jnp.sqrt(jnp.sum(v * v, axis=1, keepdims=True))
    return v / jnp.maximum(n, 1e-12)


if __name__ == "__main__":
    B, S, H, V = 2, 8, 32, 64
    key = jax.random.PRNGKey(0)
    k_ids, _ = jax.random.split(key)
    input_ids = jax.random.randint(k_ids, (B, S), 0, V, dtype=jnp.int32)
    # ragged lengths: sequence 0 fully valid, sequence 1 has padding
    attention_mask = jnp.array(
        [[1, 1, 1, 1, 1, 1, 1, 1],
         [1, 1, 1, 1, 1, 0, 0, 0]], dtype=jnp.int32)

    for pt in ("mean", "cls", "max"):
        model = MultilingualLM(model_type="sbert", pooling_type=pt,
                               vocab_size=V, hidden=H, seed=0)
        out = jax.block_until_ready(model(input_ids, attention_mask))
        assert out.shape == (B, H)
        ref = _reference_forward(model, input_ids, attention_mask)
        assert jnp.allclose(out, ref, atol=2e-2, rtol=2e-2), (
            pt, float(jnp.max(jnp.abs(out - ref))))

    print("KERNEL_OK")
</pallas_src>

<mosaic_0001>
module attributes {stable_mosaic.version = 11 : i64} {
  func.func @_fused_kernel(%arg0: i32, %arg1: memref<64x1xi32, #tpu.memory_space<vmem>>, %arg2: memref<64x1xf32, #tpu.memory_space<vmem>>, %arg3: memref<128x128xbf16, #tpu.memory_space<vmem>>, %arg4: memref<128x128xbf16, #tpu.memory_space<vmem>>, %arg5: memref<1x128xf32, #tpu.memory_space<vmem>>, %arg6: memref<8x128xf32, #tpu.memory_space<vmem>>) attributes {dimension_semantics = [#tpu.dimension_semantics<parallel>], iteration_bounds = array<i64: 1>, scalar_prefetch = 0 : i64, scratch_operands = 0 : i64, tpu.core_type = #tpu.core_type<tc>, window_params = [{transform_indices = @transform_0, window_bounds = array<i64: 64, 1>}, {transform_indices = @transform_1, window_bounds = array<i64: 64, 1>}, {pipeline_mode = #tpu.pipeline_mode<synchronous>, transform_indices = @transform_2, window_bounds = array<i64: 128, 128>}, {pipeline_mode = #tpu.pipeline_mode<synchronous>, transform_indices = @transform_3, window_bounds = array<i64: 128, 128>}, {pipeline_mode = #tpu.pipeline_mode<synchronous>, transform_indices = @transform_4, window_bounds = array<i64: 1, 128>}, {transform_indices = @transform_5, window_bounds = array<i64: 8, 128>}]} {
    %c0 = arith.constant 0 : index
    %c0_0 = arith.constant 0 : index
    %0 = vector.load %arg1[%c0, %c0_0] : memref<64x1xi32, #tpu.memory_space<vmem>>, vector<64x1xi32>
    %1 = tpu.iota {dimensions = array<i32: 1>} : vector<64x128xi32>
    %2 = vector.broadcast %0 : vector<64x1xi32> to vector<64x128xi32>
    %3 = arith.cmpi eq, %1, %2 : vector<64x128xi32>
    %4 = arith.extui %3 : vector<64x128xi1> to vector<64x128xi32>
    %5 = arith.sitofp %4 : vector<64x128xi32> to vector<64x128xf32>
    %6 = arith.truncf %5 : vector<64x128xf32> to vector<64x128xbf16>
    %c0_1 = arith.constant 0 : index
    %c0_2 = arith.constant 0 : index
    %7 = vector.load %arg3[%c0_1, %c0_2] : memref<128x128xbf16, #tpu.memory_space<vmem>>, vector<128x128xbf16>
    %cst = arith.constant dense<0.000000e+00> : vector<64x128xf32>
    %8 = tpu.matmul %6, %7, %cst {dimension_numbers = #tpu.dot_dimension_numbers<[1], [0], [0], [1], [0, 0, 1, 1], [], []>} : vector<64x128xbf16>, vector<128x128xbf16>, vector<64x128xf32> -> vector<64x128xf32>
    %9 = arith.truncf %8 : vector<64x128xf32> to vector<64x128xbf16>
    %c0_3 = arith.constant 0 : index
    %c0_4 = arith.constant 0 : index
    %10 = vector.load %arg4[%c0_3, %c0_4] : memref<128x128xbf16, #tpu.memory_space<vmem>>, vector<128x128xbf16>
    %cst_5 = arith.constant dense<0.000000e+00> : vector<64x128xf32>
    %11 = tpu.matmul %9, %10, %cst_5 {dimension_numbers = #tpu.dot_dimension_numbers<[1], [0], [0], [1], [0, 0, 1, 1], [], []>} : vector<64x128xbf16>, vector<128x128xbf16>, vector<64x128xf32> -> vector<64x128xf32>
    %c0_6 = arith.constant 0 : index
    %c0_7 = arith.constant 0 : index
    %12 = vector.load %arg5[%c0_6, %c0_7] : memref<1x128xf32, #tpu.memory_space<vmem>>, vector<1x128xf32>
    %13 = vector.broadcast %12 : vector<1x128xf32> to vector<64x128xf32>
    %14 = arith.addf %11, %13 : vector<64x128xf32>
    %15 = math.tanh %14 : vector<64x128xf32>
    %16 = vector.shape_cast %15 : vector<64x128xf32> to vector<8x8x128xf32>
    %c0_8 = arith.constant 0 : index
    %c0_9 = arith.constant 0 : index
    %17 = vector.load %arg2[%c0_8, %c0_9] : memref<64x1xf32, #tpu.memory_space<vmem>>, vector<64x1xf32>
    %18 = vector.shape_cast %17 : vector<64x1xf32> to vector<8x8x1xf32>
    %19 = vector.broadcast %18 : vector<8x8x1xf32> to vector<8x8x128xf32>
    %20 = arith.mulf %16, %19 : vector<8x8x128xf32>
    %cst_10 = arith.constant dense<0.000000e+00> : vector<8x128xf32>
    %21 = vector.multi_reduction <add>, %20, %cst_10 [1] : vector<8x8x128xf32> to vector<8x128xf32>
    %cst_11 = arith.constant dense<0.000000e+00> : vector<8x1xf32>
    %22 = vector.multi_reduction <add>, %18, %cst_11 [1] : vector<8x8x1xf32> to vector<8x1xf32>
    %cst_12 = arith.constant 9.99999971E-10 : f32
    %23 = vector.broadcast %cst_12 : f32 to vector<8x1xf32>
    %24 = arith.maximumf %22, %23 : vector<8x1xf32>
    %25 = vector.broadcast %24 : vector<8x1xf32> to vector<8x128xf32>
    %26 = arith.divf %21, %25 : vector<8x128xf32>
    %27 = arith.mulf %26, %26 : vector<8x128xf32>
    %cst_13 = arith.constant dense<0.000000e+00> : vector<8xf32>
    %28 = vector.multi_reduction <add>, %27, %cst_13 [1] : vector<8x128xf32> to vector<8xf32>
    %29 = vector.shape_cast %28 : vector<8xf32> to vector<8x1xf32>
    %cst_14 = arith.constant 1.000000e-24 : f32
    %30 = vector.broadcast %cst_14 : f32 to vector<8x1xf32>
    %31 = arith.maximumf %29, %30 : vector<8x1xf32>
    %32 = math.rsqrt %31 : vector<8x1xf32>
    %33 = vector.broadcast %32 : vector<8x1xf32> to vector<8x128xf32>
    %34 = arith.mulf %26, %33 : vector<8x128xf32>
    %c0_15 = arith.constant 0 : index
    %c0_16 = arith.constant 0 : index
    %35 = vector.load %arg6[%c0_15, %c0_16] : memref<8x128xf32, #tpu.memory_space<vmem>>, vector<8x128xf32>
    tpu.vector_store %arg6[%c0_15, %c0_16], %34 {strides = array<i32>} : memref<8x128xf32, #tpu.memory_space<vmem>>, vector<8x128xf32>,
    return
  }
  func.func @transform_0(%arg0: i32) -> (i32, i32) {
    %c0_i32 = arith.constant 0 : i32
    %c0_i32_0 = arith.constant 0 : i32
    return %arg0, %c0_i32 : i32, i32
  }
  func.func @transform_1(%arg0: i32) -> (i32, i32) {
    %c0_i32 = arith.constant 0 : i32
    %c0_i32_0 = arith.constant 0 : i32
    return %arg0, %c0_i32 : i32, i32
  }
  func.func @transform_2(%arg0: i32) -> (i32, i32) {
    %c0_i32 = arith.constant 0 : i32
    %c0_i32_0 = arith.constant 0 : i32
    %c0_i32_1 = arith.constant 0 : i32
    return %c0_i32, %c0_i32_0 : i32, i32
  }
  func.func @transform_3(%arg0: i32) -> (i32, i32) {
    %c0_i32 = arith.constant 0 : i32
    %c0_i32_0 = arith.constant 0 : i32
    %c0_i32_1 = arith.constant 0 : i32
    return %c0_i32, %c0_i32_0 : i32, i32
  }
  func.func @transform_4(%arg0: i32) -> (i32, i32) {
    %c0_i32 = arith.constant 0 : i32
    %c0_i32_0 = arith.constant 0 : i32
    %c0_i32_1 = arith.constant 0 : i32
    return %c0_i32, %c0_i32_0 : i32, i32
  }
  func.func @transform_5(%arg0: i32) -> (i32, i32) {
    %c0_i32 = arith.constant 0 : i32
    %c0_i32_0 = arith.constant 0 : i32
    return %arg0, %c0_i32 : i32, i32
  }
}

</mosaic_0001>

<bundles_post_ra>
// kernel: tpu_custom_call.1
= control target key start
LH: loop header
LB: loop body
LE: loop exit
PB: predicated region body
PF: predicated region fallthrough
CT: control target
= control target key end

     0   :  { %vm465_vm0 = vcmask 7168   ;;  %v865_v2 = vmov 0   ;;  %s1059_s0 = inlined_call_operand.vmem [shape: s32[64,1], index: 0, kind: input, shape index: {}]   ;;  %s1060_s1 = inlined_call_operand.vmem [shape: f32[64,1], index: 1, kind: input, shape index: {}]   ;;  %s1061_s2 = inlined_call_operand.vmem [shape: bf16[128,128], index: 2, kind: input, shape index: {}]   ;;  %s1062_s3 = inlined_call_operand.vmem [shape: bf16[128,128], index: 3, kind: input, shape index: {}]   ;;  %s1063_s4 = inlined_call_operand.vmem [shape: f32[1,128], index: 4, kind: input, shape index: {}]   ;;  %s1064_s5 = inlined_call_operand.hbm [shape: f32[8,128], index: 5, kind: output, shape index: {}]  }
   0x1   :  { %v24_v0 = vld [vmem:[%s1059_s0 + $0x10] sm:$0xff]  ;;  %v22_v1 = vld [vmem:[%s1059_s0] sm:$0xff]  ;;  %792 = vset.pattern.permute.xlu1 %v865_v2  ;;  %791 = vset.pattern.permute.xlu0 %v865_v2  ;;  %v25_v3 = vld [vmem:[%s1059_s0 + $0x18] sm:$0xff] }
   0x2   :  { %39 = vperm.xlu1 %792, %v24_v0   ;;  %33 = vperm.xlu0 %791, %v22_v1   ;;  %v23_v4 = vld [vmem:[%s1059_s0 + $0x8] sm:$0xff]  ;;  %v920_v7 = vld [vmem:[%s1060_s1] sm:$0xff]  ;;  %v925_v8 = vld [vmem:[%s1060_s1 + $0x10] sm:$0xff] }
   0x3   :  { %v913_v5 = vld [vmem:[%s1060_s1 + $0x8] sm:$0xff]  ;;  %v930_v9 = vld [vmem:[%s1060_s1 + $0x18] sm:$0xff]  ;;  %v466_v11 = vsel %vm465_vm0, %v920_v7, 0.0  ;;  %v480_v12 = vsel %vm465_vm0, %v925_v8, 0.0  ;;  %v941_v14 = vld [vmem:[%s1060_s1 + $0x20] sm:$0xff] }
   0x4   :  { %v473_v6 = vsel %vm465_vm0, %v913_v5, 0.0  ;;  %v487_v13 = vsel %vm465_vm0, %v930_v9, 0.0  ;;  %v946_v15 = vld [vmem:[%s1060_s1 + $0x28] sm:$0xff]  ;;  %v467_v17 = vrot.slane %v466_v11, 4  ;;  %v481_v18 = vrot.slane %v480_v12, 4  ;;  %v956_v21 = vld [vmem:[%s1060_s1 + $0x30] sm:$0xff] }
   0x5   :  { %v474_v10 = vrot.slane %v473_v6, 4  ;;  %v27_v16 = vld [vmem:[%s1059_s0 + $0x28] sm:$0xff]  ;;  %v488_v19 = vrot.slane %v487_v13, 4  ;;  %v494_v20 = vsel %vm465_vm0, %v941_v14, 0.0  ;;  %v26_v22 = vld [vmem:[%s1059_s0 + $0x20] sm:$0xff]  ;;  %v501_v25 = vsel %vm465_vm0, %v946_v15, 0.0 }
   0x6   :  { %42 = vperm.xlu1 %792, %v25_v3   ;;  %36 = vperm.xlu0 %791, %v23_v4   ;;  %v495_v24 = vrot.slane %v494_v20, 4  ;;  %v793_v26 = vld [vmem:[%s1061_s2 + $0x38] sm:$0xff]   ;;  %v468_v27 = vadd.f32 %v467_v17, %v466_v11  ;;  %v482_v28 = vadd.f32 %v481_v18, %v480_v12  ;;  %v794_v30 = vld [vmem:[%s1061_s2 + $0x30] sm:$0xff]   ;;  %v508_v33 = vsel %vm465_vm0, %v956_v21, 0.0  ;;  %v795_v45 = vld [vmem:[%s1061_s2 + $0x28] sm:$0xff]  }
   0x7   :  { %v475_v23 = vadd.f32 %v474_v10, %v473_v6  ;;  %v489_v29 = vadd.f32 %v488_v19, %v487_v13  ;;  %740 = vmatprep.subr.bf16.mxu0 %v793_v26  ;;  %v29_v34 = vld [vmem:[%s1059_s0 + $0x38] sm:$0xff]  ;;  %v28_v35 = vld [vmem:[%s1059_s0 + $0x30] sm:$0xff]  ;;  %v502_v38 = vrot.slane %v501_v25, 4  ;;  %v509_v44 = vrot.slane %v508_v33, 4  ;;  %v796_v55 = vld [vmem:[%s1061_s2 + $0x20] sm:$0xff]  }
   0x8   :  { %v496_v32 = vadd.f32 %v495_v24, %v494_v20  ;;  %v469_v36 = vrot.slane %v468_v27, 2  ;;  %v483_v37 = vrot.slane %v482_v28, 2  ;;  %741 = vmatpush3.bf16.msra.mxu0 %v793_v26  ;;  %v980_v41 = vld [vmem:[%s1060_s1 + $0x38] sm:$0xff]  ;;  %v798_v3 = vld [vmem:[%s1061_s2 + $0x10] sm:$0xff]  }
   0x9   :  { %v476_v31 = vrot.slane %v475_v23, 2  ;;  %v490_v40 = vrot.slane %v489_v29, 2  ;;  %742 = vmatprep.subr.bf16.mxu0 %v794_v30  ;;  %v503_v49 = vadd.f32 %v502_v38, %v501_v25  ;;  %v515_v53 = vsel %vm465_vm0, %v980_v41, 0.0  ;;  %v797_v0 = vld [vmem:[%s1061_s2 + $0x18] sm:$0xff]  }
   0xa   :  { %48 = vperm.xlu1 %792, %v27_v16   ;;  %45 = vperm.xlu0 %791, %v26_v22   ;;  %v470_v42 = vadd.f32 %v469_v36, %v468_v27  ;;  %v484_v43 = vadd.f32 %v483_v37, %v482_v28  ;;  %v497_v47 = vrot.slane %v496_v32, 2  ;;  %v510_v57 = vadd.f32 %v509_v44, %v508_v33 }
   0xb   :  { %v477_v39 = vadd.f32 %v476_v31, %v475_v23  ;;  %v491_v52 = vadd.f32 %v490_v40, %v489_v29  ;;  %v504_v58 = vrot.slane %v503_v49, 2  ;;  %v516_v59 = vrot.slane %v515_v53, 4 }
   0xc   :  { %v471_v48 = vrot.slane %v470_v42, 1  ;;  %743 = vmatpush3.bf16.msra.mxu0 %v794_v30  ;;  %v485_v51 = vrot.slane %v484_v43, 1  ;;  %v498_v56 = vadd.f32 %v497_v47, %v496_v32  ;;  %v511_v2 = vrot.slane %v510_v57, 2 }
   0xd   :  { %v478_v46 = vrot.slane %v477_v39, 1  ;;  %744 = vmatprep.subr.bf16.mxu0 %v795_v45  ;;  %v492_v63 = vrot.slane %v491_v52, 1  ;;  %v505_v6 = vadd.f32 %v504_v58, %v503_v49 }
   0xe   :  { %54 = vperm.xlu1 %792, %v29_v34   ;;  %51 = vperm.xlu0 %791, %v28_v35   ;;  %v472_v54 = vadd.f32 %v471_v48, %v470_v42  ;;  %v486_v62 = vadd.f32 %v485_v51, %v484_v43  ;;  %v499_v1 = vrot.slane %v498_v56, 1  ;;  %v512_v10 = vadd.f32 %v511_v2, %v510_v57 }
   0xf   :  { %v479_v50 = vadd.f32 %v478_v46, %v477_v39 }
  0x10   :  { %745 = vmatpush3.bf16.msra.mxu0 %v795_v45  ;;  %v522_v61 = vmax.f32 %v472_v54, 1e-09  ;;  %v524_v4 = vmax.f32 %v486_v62, 1e-09 }
  0x11   :  { %v523_v60 = vmax.f32 %v479_v50, 1e-09  ;;  %746 = vmatprep.subr.bf16.mxu0 %v796_v55 }
  0x12   :  { %376 = vperm.xlu1 %792, %v913_v5   ;;  %371 = vperm.xlu0 %791, %v920_v7   ;;  %v493_v5 = vadd.f32 %v492_v63, %v491_v52  ;;  %v517_v7 = vadd.f32 %v516_v59, %v515_v53 }
  0x14   :  { %747 = vmatpush3.bf16.msra.mxu0 %v796_v55 }
  0x15   :  { %748 = vmatprep.subr.bf16.mxu0 %v797_v0 }
  0x16   :  { %537 = vperm.xlu1 %792, %v523_v60   ;;  %532 = vperm.xlu0 %791, %v522_v61  }
  0x18   :  { %749 = vmatpush3.bf16.msra.mxu0 %v797_v0 }
  0x19   :  { %10 = vsyncpa [#allocation3], 0  ;;  %v525_v11 = vmax.f32 %v493_v5, 1e-09  ;;  %v500_v12 = vadd.f32 %v499_v1, %v498_v56  ;;  %v506_v13 = vrot.slane %v505_v6, 1  ;;  %v518_v16 = vrot.slane %v517_v7, 2  ;;  %750 = vmatprep.subr.bf16.mxu0 %v798_v3 }
  0x1a   :  { %542 = vperm.xlu1 %792, %v524_v4   ;;  %381 = vperm.xlu0 %791, %v925_v8   ;;  %v799_v17 = vld [vmem:[%s1061_s2 + $0x8] sm:$0xff]   ;;  %v513_v20 = vrot.slane %v512_v10, 1  ;;  %v800_v8 = vld [vmem:[%s1061_s2] sm:$0xff]   ;;  %v801_v28 = vld [vmem:[%s1062_s3 + $0x38] sm:$0xff]   ;;  %v30_v31 = vlaneseq  ;;  %v866_v37 = vmov 1.0|1.0  }
  0x1b   :  { %v526_v18 = vmax.f32 %v500_v12, 1e-09  ;;  %v507_v19 = vadd.f32 %v506_v13, %v505_v6  ;;  %v519_v22 = vadd.f32 %v518_v16, %v517_v7  ;;  %764 = vmatprep.subr.bf16.mxu1 %v801_v28  ;;  %v805_v29 = vld [vmem:[%s1062_s3 + $0x18] sm:$0xff]   ;;  %v806_v30 = vld [vmem:[%s1062_s3 + $0x10] sm:$0xff]   ;;  %v807_v42 = vld [vmem:[%s1062_s3 + $0x8] sm:$0xff]   ;;  %vm602_vm13 = vcmask 1041409  }
  0x1c   :  { %751 = vmatpush3.bf16.msra.mxu0 %v798_v3  ;;  %v514_v24 = vadd.f32 %v513_v20, %v512_v10  ;;  %765 = vmatpush3.bf16.msra.mxu1 %v801_v28  ;;  %v31_v34 = vand.u32 127, %v30_v31  ;;  %v808_v43 = vld [vmem:[%s1062_s3] sm:$0xff]   ;;  %vm604_vm14 = vcmask 1042434   ;;  %vm606_vm15 = vcmask 1043459  }
  0x1d   :  { %752 = vmatprep.subr.bf16.mxu0 %v799_v17  ;;  %v527_v23 = vmax.f32 %v507_v19, 1e-09  ;;  %v520_v25 = vrot.slane %v519_v22, 1  ;;  %v707_v62 = vld [vmem:[%s1063_s4] ss:$0 sm:$0xff]  ;;  %vm608_vm0 = vcmask 1044484  }
  0x1e   :  { %547 = vperm.xlu1 %792, %v525_v11   ;;  %386 = vperm.xlu0 %791, %v930_v9   ;;  %v528_v9 = vmax.f32 %v514_v24, 1e-09  ;;  %s867_s4 = smov [#allocation2]  }
  0x1f   :  { %v521_v26 = vadd.f32 %v520_v25, %v519_v22  ;;  %s675_s30 = sshll.u32 %s867_s4, 4  ;;  %s676_s30 = int_to_ptr.vmem [resolvable:$true] %s675_s30 }
  0x20   :  { %753 = vmatpush3.bf16.msra.mxu0 %v799_v17  ;;  %s843_s0 = scalar_lea.vmem %s676_s30, 128  ;;  %p848_p1 = scmp.lt.s32.totalorder %s676_s30, %s676_s30 }
  0x21   :  { %754 = vmatprep.subr.bf16.mxu0 %v800_v8  ;;  %v529_v27 = vmax.f32 %v521_v26, 1e-09  ;;  %p844_p0 = scmp.ne.s32.totalorder %s676_s30, %s843_s0  ;;  %p849_p2 = scmp.lt.s32.totalorder %s843_s0, %s843_s0 }
  0x22   :  { %552 = vperm.xlu1 %792, %v526_v18   ;;  %391 = vperm.xlu0 %791, %v941_v14   ;;  %v802_v14 = vld [vmem:[%s1062_s3 + $0x30] sm:$0xff]  }
  0x23   :  { %766 = vmatprep.subr.bf16.mxu1 %v802_v14  ;;  %p850_p3 = por %p849_p2, %p848_p1 }
  0x24   :  { %755 = vmatpush3.bf16.msra.mxu0 %v800_v8  ;;  %767 = vmatpush3.bf16.msra.mxu1 %v802_v14 }
  0x25   :  { %p851_p4 = pnand %p850_p3, %p844_p0 }
  0x26   :  { %557 = vperm.xlu1 %792, %v527_v23   ;;  %396 = vperm.xlu0 %791, %v946_v15   ;;  %v803_v15 = vld [vmem:[%s1062_s3 + $0x28] sm:$0xff]  }
  0x27   :  { %768 = vmatprep.subr.bf16.mxu1 %v803_v15 }
  0x28   :  { %769 = vmatpush3.bf16.msra.mxu1 %v803_v15 }
  0x2a   :  { %562 = vperm.xlu1 %792, %v528_v9   ;;  %401 = vperm.xlu0 %791, %v956_v21   ;;  %v804_v21 = vld [vmem:[%s1062_s3 + $0x20] sm:$0xff]  }
  0x2b   :  { %770 = vmatprep.subr.bf16.mxu1 %v804_v21 }
  0x2c   :  { %771 = vmatpush3.bf16.msra.mxu1 %v804_v21 }
  0x2d   :  { %772 = vmatprep.subr.bf16.mxu1 %v805_v29 }
  0x2e   :  { %567 = vperm.xlu1 %792, %v529_v27   ;;  %406 = vperm.xlu0 %791, %v980_v41  }
  0x30   :  { %773 = vmatpush3.bf16.msra.mxu1 %v805_v29 }
  0x31   :  { %774 = vmatprep.subr.bf16.mxu1 %v806_v30 }
  0x34   :  { %775 = vmatpush3.bf16.msra.mxu1 %v806_v30 }
  0x35   :  { %776 = vmatprep.subr.bf16.mxu1 %v807_v42 }
  0x38   :  { %777 = vmatpush3.bf16.msra.mxu1 %v807_v42 }
  0x39   :  { %778 = vmatprep.subr.bf16.mxu1 %v808_v43 }
  0x3c   :  { %779 = vmatpush3.bf16.msra.mxu1 %v808_v43 }
  0x7d   :  { %v40_v32 = vpop.permute.xlu1 %39  ;;  %v34_v33 = vpop.permute.xlu0 %33 }
  0x7e   :  { %vm58_vm1 = vcmp.eq.s32.totalorder %v31_v34, %v40_v32  ;;  %vm56_vm4 = vcmp.eq.s32.totalorder %v31_v34, %v34_v33 }
  0x81   :  { %v43_v35 = vpop.permute.xlu1 %42  ;;  %v37_v36 = vpop.permute.xlu0 %36 }
  0x82   :  { %vm59_vm2 = vcmp.eq.s32.totalorder %v31_v34, %v43_v35  ;;  %vm57_vm3 = vcmp.eq.s32.totalorder %v31_v34, %v37_v36 }
  0x83   :  { %vm701_vm5 = vmpackc.low %vm59_vm2, %vm58_vm1  ;;  %vm610_vm1 = vcmask 1045509   ;;  %vm612_vm2 = vcmask 1046534  }
  0x84   :  { %vm699_vm6 = vmpackc.low %vm57_vm3, %vm56_vm4  ;;  %vm614_vm3 = vcmask 1047559  }
  0x85   :  { %756 = vmatprep.mubr.msk.bf16.mxu0 %vm699_vm6, %v866_v37  ;;  %v49_v38 = vpop.permute.xlu1 %48  ;;  %v46_v39 = vpop.permute.xlu0 %45 }
  0x86   :  { %vm61_vm7 = vcmp.eq.s32.totalorder %v31_v34, %v49_v38  ;;  %757 = vmatmul.mubr.msk.bf16.vlgmr.msra.gmra.mxu0 %vm701_vm5, %v866_v37  ;;  %vm60_vm8 = vcmp.eq.s32.totalorder %v31_v34, %v46_v39 }
  0x87   :  { %vm703_vm9 = vmpackc.low %vm61_vm7, %vm60_vm8 }
  0x88   :  { %760 = vmatprep.mubr.msk.bf16.mxu0 %vm703_vm9, %v866_v37 }
  0x89   :  { %v55_v40 = vpop.permute.xlu1 %54  ;;  %v52_v41 = vpop.permute.xlu0 %51 }
  0x8a   :  { %vm63_vm10 = vcmp.eq.s32.totalorder %v31_v34, %v55_v40  ;;  %vm62_vm11 = vcmp.eq.s32.totalorder %v31_v34, %v52_v41 }
  0x8b   :  { %vm705_vm12 = vmpackc.low %vm63_vm10, %vm62_vm11 }
  0x8d   :  { %v377_v56 = vpop.permute.xlu1 %376  ;;  %v372_v57 = vpop.permute.xlu0 %371 }
  0x8e   :  { %761 = vmatmul.mubr.msk.bf16.gmra.mxu0 %vm705_vm12, %v866_v37 }
  0x91   :  { %v538_v58 = vpop.permute.xlu1 %537  ;;  %v533_v59 = vpop.permute.xlu0 %532 }
  0x95   :  { %v543_v60 = vpop.permute.xlu1 %542  ;;  %v382_v61 = vpop.permute.xlu0 %381 }
  0x99   :  { %v548_v2 = vpop.permute.xlu1 %547  ;;  %v387_v4 = vpop.permute.xlu0 %386 }
  0x9d   :  { %v553_v12 = vpop.permute.xlu1 %552  ;;  %v392_v16 = vpop.permute.xlu0 %391 }
  0xa1   :  { %v558_v8 = vpop.permute.xlu1 %557  ;;  %v397_v25 = vpop.permute.xlu0 %396 }
  0xa5   :  { %v563_v15 = vpop.permute.xlu1 %562  ;;  %v402_v32 = vpop.permute.xlu0 %401 }
 0x146   :  { %v758_v44 = vpop.f32.mrf.mxu0 }
 0x148   :  { %v182_v45 = vpop.f32.mrf.mxu0 }
 0x14a   :  { %v759_v46 = vpop.f32.mrf.mxu0 }
 0x14b   :  { %v214_v49 = vpack.c.bf16 %v759_v46, %v758_v44  ;;  %v568_v44 = vpop.permute.xlu1 %567 }
 0x14c   :  { %v185_v47 = vpop.f32.mrf.mxu0 }
 0x14d   :  { %v213_v48 = vpack.c.bf16 %v185_v47, %v182_v45 }
 0x14e   :  { %v762_v50 = vpop.f32.mrf.mxu0 }
 0x14f   :  { %780 = vmatprep.mubr.bf16.mxu1 %v213_v48 }
 0x150   :  { %v198_v51 = vpop.f32.mrf.mxu0  ;;  %781 = vmatmul.mubr.bf16.vlgmr.msra.gmra.mxu1 %v214_v49  ;;  %v407_v49 = vpop.permute.xlu0 %406 }
 0x152   :  { %v763_v52 = vpop.f32.mrf.mxu0 }
 0x153   :  { %v216_v55 = vpack.c.bf16 %v763_v52, %v762_v50 }
 0x154   :  { %v201_v53 = vpop.f32.mrf.mxu0 }
 0x155   :  { %v215_v54 = vpack.c.bf16 %v201_v53, %v198_v51 }
 0x157   :  { %784 = vmatprep.mubr.bf16.mxu1 %v215_v54 }
 0x158   :  { %785 = vmatmul.mubr.bf16.gmra.mxu1 %v216_v55 }
 0x210   :  { %v782_v63 = vpop.f32.mrf.mxu1 }
 0x211   :  { %v331_v0 = vadd.f32 %v782_v63, %v707_v62 }
 0x212   :  { %v322_v1 = vpop.f32.mrf.mxu1 }
 0x213   :  { %809 = vtanh.f32 %v331_v0  ;;  %v323_v3 = vadd.f32 %v707_v62, %v322_v1 }
 0x214   :  { %v783_v5 = vpop.f32.mrf.mxu1 }
 0x215   :  { %811 = vtanh.f32 %v323_v3  ;;  %v334_v6 = vadd.f32 %v783_v5, %v707_v62 }
 0x216   :  { %v325_v7 = vpop.f32.mrf.mxu1 }
 0x217   :  { %813 = vtanh.f32 %v334_v6  ;;  %v326_v10 = vadd.f32 %v707_v62, %v325_v7 }
 0x218   :  { %v786_v11 = vpop.f32.mrf.mxu1 }
 0x219   :  { %815 = vtanh.f32 %v326_v10  ;;  %v347_v13 = vadd.f32 %v786_v11, %v707_v62 }
 0x21a   :  { %v338_v17 = vpop.f32.mrf.mxu1 }
 0x21b   :  { %817 = vtanh.f32 %v347_v13  ;;  %v339_v18 = vadd.f32 %v707_v62, %v338_v17 }
 0x21c   :  { %v787_v19 = vpop.f32.mrf.mxu1 }
 0x21d   :  { %819 = vtanh.f32 %v339_v18  ;;  %v350_v20 = vadd.f32 %v787_v19, %v707_v62 }
 0x21e   :  { %v341_v22 = vpop.f32.mrf.mxu1 }
 0x21f   :  { %821 = vtanh.f32 %v350_v20  ;;  %v342_v23 = vadd.f32 %v707_v62, %v341_v22 }
 0x220   :  { %v810_v24 = vpop.eup %809 }
 0x221   :  { %v411_v9 = vmul.f32 %v810_v24, %v382_v61  ;;  %823 = vtanh.f32 %v342_v23 }
 0x222   :  { %v812_v26 = vpop.eup %811  ;;  %825 = vrcp.f32 %v538_v58 }
 0x223   :  { %v429_v27 = vrot.slane %v411_v9, 4  ;;  %v409_v28 = vmul.f32 %v812_v26, %v372_v57  ;;  %827 = vrcp.f32 %v533_v59 }
 0x224   :  { %v814_v14 = vpop.eup %813  ;;  %829 = vrcp.f32 %v543_v60 }
 0x225   :  { %v430_v21 = vadd.f32 %v429_v27, %v411_v9  ;;  %v417_v29 = vrot.slane %v409_v28, 4  ;;  %v412_v30 = vmul.f32 %v814_v14, %v387_v4  ;;  %831 = vrcp.f32 %v548_v2 }
 0x226   :  { %v816_v31 = vpop.eup %815  ;;  %833 = vrcp.f32 %v553_v12 }
 0x227   :  { %v431_v33 = vrot.slane %v430_v21, 2  ;;  %v418_v34 = vadd.f32 %v417_v29, %v409_v28  ;;  %v435_v35 = vrot.slane %v412_v30, 4  ;;  %v410_v36 = vmul.f32 %v816_v31, %v377_v56 }
 0x228   :  { %v818_v37 = vpop.eup %817  ;;  %835 = vrcp.f32 %v558_v8 }
 0x229   :  { %v432_v38 = vadd.f32 %v431_v33, %v430_v21  ;;  %v419_v39 = vrot.slane %v418_v34, 2  ;;  %v436_v40 = vadd.f32 %v435_v35, %v412_v30  ;;  %v423_v41 = vrot.slane %v410_v36, 4 }
 0x22a   :  { %v820_v42 = vpop.eup %819  ;;  %v415_v43 = vmul.f32 %v818_v37, %v402_v32  ;;  %837 = vrcp.f32 %v563_v15 }
 0x22b   :  { %v420_v45 = vadd.f32 %v419_v39, %v418_v34  ;;  %v437_v46 = vrot.slane %v436_v40, 2  ;;  %v424_v47 = vadd.f32 %v423_v41, %v410_v36  ;;  %v433_v50 = vrot.slane %v432_v38, 1 }
 0x22c   :  { %v822_v48 = vpop.eup %821  ;;  %v453_v51 = vrot.slane %v415_v43, 4  ;;  %v413_v52 = vmul.f32 %v820_v42, %v392_v16  ;;  %839 = vrcp.f32 %v568_v44 }
 0x22d   :  { %v421_v53 = vrot.slane %v420_v45, 1  ;;  %v438_v54 = vadd.f32 %v437_v46, %v436_v40  ;;  %v425_v55 = vrot.slane %v424_v47, 2  ;;  %v416_v56 = vmul.f32 %v822_v48, %v407_v49 }
 0x22e   :  { %v824_v57 = vpop.eup %823  ;;  %v441_v58 = vrot.slane %v413_v52, 4  ;;  %v454_v59 = vadd.f32 %v453_v51, %v415_v43  ;;  %v434_v1 = vadd.f32 %v433_v50, %v432_v38 }
 0x22f   :  { %v422_v60 = vadd.f32 %v421_v53, %v420_v45  ;;  %v426_v61 = vadd.f32 %v425_v55, %v424_v47  ;;  %v414_v62 = vmul.f32 %v824_v57, %v397_v25  ;;  %v439_v63 = vrot.slane %v438_v54, 1  ;;  %v826_v4 = vpop.eup %825 }
 0x230   :  { %v442_v0 = vadd.f32 %v441_v58, %v413_v52  ;;  %v455_v2 = vrot.slane %v454_v59, 2  ;;  %v459_v3 = vrot.slane %v416_v56, 4  ;;  %v828_v7 = vpop.eup %827 }
 0x231   :  { %v427_v5 = vrot.slane %v426_v61, 1  ;;  %v447_v6 = vrot.slane %v414_v62, 4  ;;  %v830_v13 = vpop.eup %829  ;;  %v440_v18 = vadd.f32 %v439_v63, %v438_v54  ;;  %v1037_v19 = vmul.f32 %v828_v7, %v422_v60 }
 0x232   :  { %v443_v10 = vrot.slane %v442_v0, 2  ;;  %v456_v11 = vadd.f32 %v455_v2, %v454_v59  ;;  %v460_v12 = vadd.f32 %v459_v3, %v416_v56  ;;  %v575_v23 = vmul.f32 %v830_v13, %v434_v1  ;;  %v832_v24 = vpop.eup %831 }
 0x233   :  { %v428_v16 = vadd.f32 %v427_v5, %v426_v61  ;;  %v448_v17 = vadd.f32 %v447_v6, %v414_v62  ;;  %v834_v28 = vpop.eup %833  ;;  %v577_v15 = vmul.f32 %v832_v24, %v440_v18  ;;  %v586_v21 = vmul.f32 %v1037_v19, %v1037_v19 }
 0x234   :  { %v444_v20 = vadd.f32 %v443_v10, %v442_v0  ;;  %v457_v22 = vrot.slane %v456_v11, 1  ;;  %v461_v8 = vrot.slane %v460_v12, 2  ;;  %v588_v34 = vmul.f32 %v575_v23, %v575_v23 }
 0x235   :  { %v449_v25 = vrot.slane %v448_v17, 2  ;;  %v573_v9 = vmul.f32 %v826_v4, %v428_v16  ;;  %v836_v30 = vpop.eup %835  ;;  %v589_v43 = vmul.f32 %v577_v15, %v577_v15 }
 0x236   :  { %v445_v26 = vrot.slane %v444_v20, 1  ;;  %v462_v27 = vadd.f32 %v461_v8, %v460_v12  ;;  %v458_v32 = vadd.f32 %v457_v22, %v456_v11 }
 0x237   :  { %v450_v14 = vadd.f32 %v449_v25, %v448_v17  ;;  %v587_v29 = vmul.f32 %v573_v9, %v573_v9  ;;  %v838_v35 = vpop.eup %837 }
 0x238   :  { %v446_v31 = vadd.f32 %v445_v26, %v444_v20  ;;  %v463_v33 = vrot.slane %v462_v27, 1  ;;  %v583_v44 = vmul.f32 %v838_v35, %v458_v32 }
 0x239   :  { %v451_v36 = vrot.slane %v450_v14, 1  ;;  %v603_v37 = vsel %vm602_vm13, %v587_v29, %v586_v21  ;;  %v840_v41 = vpop.eup %839 }
 0x23a   :  { %v464_v38 = vadd.f32 %v463_v33, %v462_v27  ;;  %v579_v39 = vmul.f32 %v834_v28, %v446_v31  ;;  %v605_v40 = vsel %vm604_vm14, %v588_v34, %v603_v37  ;;  %v592_v50 = vmul.f32 %v583_v44, %v583_v44 }
 0x23b   :  { %v452_v42 = vadd.f32 %v451_v36, %v450_v14  ;;  %v607_v48 = vsel %vm606_vm15, %v589_v43, %v605_v40 }
 0x23c   :  { %v590_v45 = vmul.f32 %v579_v39, %v579_v39  ;;  %v585_v47 = vmul.f32 %v840_v41, %v464_v38 }
 0x23d   :  { %v581_v46 = vmul.f32 %v836_v30, %v452_v42 }
 0x23e   :  { %v609_v51 = vsel %vm608_vm0, %v590_v45, %v607_v48  ;;  %v593_v52 = vmul.f32 %v585_v47, %v585_v47 }
 0x23f   :  { %v591_v49 = vmul.f32 %v581_v46, %v581_v46 }
 0x241   :  { %v611_v53 = vsel %vm610_vm1, %v591_v49, %v609_v51 }
 0x242   :  { %v613_v54 = vsel %vm612_vm2, %v592_v50, %v611_v53 }
 0x243   :  { %v615_v55 = vsel %vm614_vm3, %v593_v52, %v613_v54 }
 0x244   :  { %617 = vadd.xlane.f32.xlu0 %v615_v55 }
 0x2cd   :  { %v618_v56 = vpop.xlane.xlu0 %617 }
 0x2ce   :  { %v619_v57 = vmax.f32 %v618_v56, 1e-24 }
 0x2d0   :  { %841 = vrsqrt.f32 %v619_v57 }
 0x2dd   :  { %v842_v58 = vpop.eup %841 }
 0x2de   :  { %v622_v59 = vrot.slane %v842_v58, 1  ;;  %v623_v60 = vrot.slane %v842_v58, 2  ;;  %v624_v61 = vrot.slane %v842_v58, 3  ;;  %v625_v62 = vrot.slane %v842_v58, 4 }
 0x2df   :  { %v626_v63 = vrot.slane %v842_v58, 5  ;;  %v627_v0 = vrot.slane %v842_v58, 6  ;;  %v628_v1 = vrot.slane %v842_v58, 7  ;;  %v637_v6 = vmul.f32 %v842_v58, %v1037_v19 }
 0x2e0   :  { %v638_v2 = vmul.f32 %v622_v59, %v573_v9  ;;  %v639_v3 = vmul.f32 %v623_v60, %v575_v23  ;;  %v640_v4 = vmul.f32 %v624_v61, %v577_v15  ;;  %v641_v5 = vmul.f32 %v625_v62, %v579_v39 }
 0x2e1   :  { %v642_v7 = vmul.f32 %v626_v63, %v581_v46  ;;  %v643_v12 = vmul.f32 %v627_v0, %v583_v44  ;;  %v644_v13 = vmul.f32 %v628_v1, %v585_v47 }
 0x2e2   :  { %v653_v10 = vrot.slane %v638_v2, 7  ;;  %v655_v11 = vrot.slane %v639_v3, 6  ;;  %v657_v17 = vrot.slane %v640_v4, 5  ;;  %v659_v20 = vrot.slane %v641_v5, 4 }
 0x2e3   :  { %v661_v8 = vrot.slane %v642_v7, 3  ;;  %v663_v24 = vrot.slane %v643_v12, 2  ;;  %v665_v25 = vrot.slane %v644_v13, 1 }
 0x2e4   :  { %v654_v16 = vsel %vm602_vm13, %v653_v10, %v637_v6 }
 0x2e5   :  { %v656_v18 = vsel %vm604_vm14, %v655_v11, %v654_v16 }
 0x2e6   :  { %v658_v22 = vsel %vm606_vm15, %v657_v17, %v656_v18 }
 0x2e7   :  { %v660_v23 = vsel %vm608_vm0, %v659_v20, %v658_v22 }
 0x2e8   :  { %v662_v19 = vsel %vm610_vm1, %v661_v8, %v660_v23 }
 0x2e9   :  { %v664_v9 = vsel %vm612_vm2, %v663_v24, %v662_v19 }
 0x2ea   :  { %v666_v26 = vsel %vm614_vm3, %v665_v25, %v664_v9 }
 0x2eb   :  { %668 = vst [vmem:[#allocation2] sm:$0xff] %v666_v26 }
 0x2ec   :  { %854 = shalt.err (!%p851_p4)
}
 0x2ed   :  { %678 = dma.vmem_to_hbm [thread:$0]  %s676_s30, 128, %s1064_s5, [#allocation3]  }
 0x2ee   :  { %863 = dma.done.wait [#allocation3], 128  }
 0x2ef   :  { %864 = vsyncadd [#allocation3], 4294967168 }
 0x2f0   :  { %682 = vsyncpa [#allocation3], 1 }

</bundles_post_ra>
